<compile_context>
chip_gen: v7x
topology: tpu7x:2x2x1
jax: 0.10.0
libtpu: 0.0.40
codegen_flags: <defaults>
</compile_context>

<pallas_src>
import math

import numpy as np
import jax
import jax.numpy as jnp
from jax.experimental import pallas as pl
from jax.experimental.pallas import tpu as pltpu

# ---- model hyper-parameters (small, consistent with the module) -------------
BATCH = 2
SEQ = 8
EMBED_DIM = 32
NUM_HEADS = 4
HEAD_DIM = EMBED_DIM // NUM_HEADS
HIDDEN_DIM = 64
LN_EPS = 1e-5                      # nn.LayerNorm default
TOKENS = BATCH * SEQ               # flattened token count (16)
HT = NUM_HEADS * TOKENS            # block-diagonal attention width (64)

# ---- packed-slab layout (every block starts at a 128-lane boundary) ---------
OFF_QKV, OFF_WO, OFF_W1, OFF_W2, OFF_BLK = 0, 128, 256, 384, 512
W_SLAB_ROWS = max(HIDDEN_DIM, HT)            # 64
W_SLAB_COLS = OFF_BLK + EMBED_DIM            # 544
VEC_SLAB_ROWS = 8 + TOKENS                   # 8 bias/gamma/beta rows + smask
VEC_SLAB_COLS = 3 * EMBED_DIM                # 96


# ---------------------------------------------------------------------------
# in-kernel helpers
# ---------------------------------------------------------------------------
def _layer_norm(h, gamma, beta):
    mu = jnp.mean(h, axis=-1, keepdims=True)
    var = jnp.mean((h - mu) ** 2, axis=-1, keepdims=True)
    return (h - mu) * jax.lax.rsqrt(var + LN_EPS) * gamma + beta


def _erf_approx(x):
    # Abramowitz & Stegun 7.1.26, |abs err| < 1.5e-7 (exp lowers to the EUP).
    a1, a2, a3, a4, a5 = 0.254829592, -0.284496736, 1.421413741, -1.453152027, 1.061405429
    p = 0.3275911
    sign = jnp.where(x >= 0, 1.0, -1.0)
    ax = jnp.abs(x)
    t = 1.0 / (1.0 + p * ax)
    poly = ((((a5 * t + a4) * t + a3) * t + a2) * t + a1) * t
    return sign * (1.0 - poly * jnp.exp(-ax * ax))


def _gelu_exact(x):
    # exact (erf-based) GELU, matching torch.nn.functional.gelu default
    return 0.5 * x * (1.0 + _erf_approx(x * (1.0 / math.sqrt(2.0))))


# ---------------------------------------------------------------------------
# Pallas kernel: the whole transformer layer in one invocation (no grid)
# ---------------------------------------------------------------------------
def transformer_layer_kernel(x_ref, w_ref, vec_ref, o_ref):
    f32, bf16 = jnp.float32, jnp.bfloat16
    T, E, HD = TOKENS, EMBED_DIM, HIDDEN_DIM

    # ---- unpack packed operands (all slices are tile-aligned -> plain loads) --
    w_qkv = w_ref[0:E, OFF_QKV:OFF_QKV + 3 * E]     # (32, 96) bf16, [Q|K|V], Q pre-scaled
    w_o   = w_ref[0:E, OFF_WO:OFF_WO + E]           # (32, 32) bf16
    w_1   = w_ref[0:E, OFF_W1:OFF_W1 + HD]          # (32, 64) bf16
    w_2   = w_ref[0:HD, OFF_W2:OFF_W2 + E]          # (64, 32) bf16
    blk   = w_ref[0:HT, OFF_BLK:OFF_BLK + E]        # (64, 32) 0/1 head-block mask (bf16)

    b_qkv = vec_ref[0:1, 0:3 * E]                   # (1, 96) f32
    b_o   = vec_ref[1:2, 0:E]
    g1    = vec_ref[2:3, 0:E]
    b1    = vec_ref[3:4, 0:E]
    b_fc1 = vec_ref[4:5, 0:HD]
    b_fc2 = vec_ref[5:6, 0:E]
    g2    = vec_ref[6:7, 0:E]
    b2    = vec_ref[7:8, 0:E]
    smask = vec_ref[8:8 + T, 0:HT]                  # (16, 64) 0/1 cross-batch mask (f32)

    x = x_ref[...]                                  # (16, 32) f32
    xb = x.astype(bf16)

    # ---- fused QKV projection over the whole token slab (one MXU push) --------
    qkv = jnp.dot(xb, w_qkv, preferred_element_type=f32) + b_qkv      # (16, 96) f32
    q = qkv[:, 0:E].astype(bf16)                    # (16, 32), already / sqrt(Dh)
    k = qkv[:, E:2 * E].astype(bf16)
    v = qkv[:, 2 * E:3 * E].astype(bf16)

    # ---- all heads + all batches in one block-diagonal computation ------------
    # k_bd/v_bd[h*T + t, e] = k/v[t, e] if column e belongs to head h, else 0.
    k_bd = jnp.concatenate([k] * NUM_HEADS, axis=0) * blk             # (64, 32) bf16
    v_bd = jnp.concatenate([v] * NUM_HEADS, axis=0) * blk             # (64, 32) bf16

    # scores: s[:, h*T:(h+1)*T] = Q_h @ K_h^T for every head at once
    s = jax.lax.dot_general(q, k_bd, (((1,), (1,)), ((), ())),
                            preferred_element_type=f32)               # (16, 64) f32

    # softmax per (head, batch) block: subtracting the global row max is an exact
    # per-row constant shift (keeps exp() <= 1); cross-batch entries are removed
    # multiplicatively (no -inf arithmetic, no fully-masked-row hazard).
    m = jnp.max(s, axis=-1, keepdims=True)
    p = jnp.exp(s - m) * smask                                        # (16, 64) f32
    pb = p.astype(bf16)

    ctx_num = jnp.dot(pb, v_bd, preferred_element_type=f32)           # (16, 32)
    ctx_den = jnp.dot(pb, blk, preferred_element_type=f32)            # (16, 32) block sums
    ctx = ctx_num * pl.reciprocal(ctx_den, approx=True)               # normalized context

    attn = jnp.dot(ctx.astype(bf16), w_o, preferred_element_type=f32) + b_o

    # ---- residual + LayerNorm 1 ------------------------------------------------
    h1 = _layer_norm(x + attn, g1, b1)

    # ---- feed-forward ----------------------------------------------------------
    ff = jnp.dot(h1.astype(bf16), w_1, preferred_element_type=f32) + b_fc1
    ff = _gelu_exact(ff)
    ff = jnp.dot(ff.astype(bf16), w_2, preferred_element_type=f32) + b_fc2

    # ---- residual + LayerNorm 2 ------------------------------------------------
    o_ref[...] = _layer_norm(h1 + ff, g2, b2).astype(o_ref.dtype)


# ---------------------------------------------------------------------------
# one-time parameter prep (wrapper-side, plain XLA):
#   * reorder qkv columns from per-head-interleaved [h][q|k|v][Dh] into
#     comp-major [Q|K|V] and fold 1/sqrt(head_dim) into the Q columns/bias
#   * pack all weights (bf16) + the constant head-block mask into ONE slab,
#     and all bias/gamma/beta rows (f32) + the cross-batch mask into a second
#     slab  -> 3 input DMAs total instead of 13
# ---------------------------------------------------------------------------
def prepare_params(params):
    (wqkv_t, bqkv, wo_t, bo, g1, beta1, w1_t, bf1, w2_t, bf2, g2, beta2) = params
    E, H, Dh, T, S, HD = EMBED_DIM, NUM_HEADS, HEAD_DIM, TOKENS, SEQ, HIDDEN_DIM

    scale = jnp.array([1.0 / math.sqrt(Dh), 1.0, 1.0], jnp.float32).reshape(1, 1, 3, 1)
    w = wqkv_t.reshape(E, H, 3, Dh) * scale          # (in, head, comp, d)
    b = bqkv.reshape(1, H, 3, Dh) * scale
    wqkv_r = jnp.transpose(w, (0, 2, 1, 3)).reshape(E, 3 * E)   # comp-major: [Q|K|V]
    bqkv_r = jnp.transpose(b, (0, 2, 1, 3)).reshape(1, 3 * E)

    # constant head block-diagonal mask: blk[h*T + t, e] = 1 iff e // Dh == h
    blk = (np.arange(HT)[:, None] // T) == (np.arange(E)[None, :] // Dh)
    # constant cross-batch mask: smask[i, h*T + t] = 1 iff i // S == t // S
    smask = (np.arange(T)[:, None] // S) == ((np.arange(HT)[None, :] % T) // S)

    w_slab = jnp.zeros((W_SLAB_ROWS, W_SLAB_COLS), jnp.bfloat16)
    w_slab = w_slab.at[0:E, OFF_QKV:OFF_QKV + 3 * E].set(wqkv_r.astype(jnp.bfloat16))
    w_slab = w_slab.at[0:E, OFF_WO:OFF_WO + E].set(wo_t.astype(jnp.bfloat16))
    w_slab = w_slab.at[0:E, OFF_W1:OFF_W1 + HD].set(w1_t.astype(jnp.bfloat16))
    w_slab = w_slab.at[0:HD, OFF_W2:OFF_W2 + E].set(w2_t.astype(jnp.bfloat16))
    w_slab = w_slab.at[0:HT, OFF_BLK:OFF_BLK + E].set(jnp.asarray(blk, jnp.bfloat16))

    vec_slab = jnp.zeros((VEC_SLAB_ROWS, VEC_SLAB_COLS), jnp.float32)
    vec_slab = vec_slab.at[0, 0:3 * E].set(bqkv_r[0])
    vec_slab = vec_slab.at[1, 0:E].set(bo[0])
    vec_slab = vec_slab.at[2, 0:E].set(g1[0])
    vec_slab = vec_slab.at[3, 0:E].set(beta1[0])
    vec_slab = vec_slab.at[4, 0:HD].set(bf1[0])
    vec_slab = vec_slab.at[5, 0:E].set(bf2[0])
    vec_slab = vec_slab.at[6, 0:E].set(g2[0])
    vec_slab = vec_slab.at[7, 0:E].set(beta2[0])
    vec_slab = vec_slab.at[8:8 + T, 0:HT].set(jnp.asarray(smask, jnp.float32))
    return w_slab, vec_slab


# ---------------------------------------------------------------------------
# wrapper: single grid-less pallas_call; everything lives whole in VMEM.
# TODO(synk): to amortize the fixed launch/DMA cost on real workloads, fuse
# several layers (or a much larger microbatch with a "parallel" grid axis for
# v7x's two TensorCores) per pallas_call; kept single-layer to match the module.
# ---------------------------------------------------------------------------
@jax.jit
def transformer_layer(x, w_slab, vec_slab):
    B, S, E = x.shape
    out = pl.pallas_call(
        transformer_layer_kernel,
        out_shape=jax.ShapeDtypeStruct((B * S, E), jnp.float32),
        in_specs=[pl.BlockSpec(memory_space=pltpu.MemorySpace.VMEM)] * 3,
        out_specs=pl.BlockSpec(memory_space=pltpu.MemorySpace.VMEM),
    )(x.reshape(B * S, E), w_slab, vec_slab)
    return out.reshape(B, S, E)


# ---------------------------------------------------------------------------
# deterministic parameter construction (PyTorch-Linear-style uniform init)
# ---------------------------------------------------------------------------
def init_params(key):
    def linear(key, in_dim, out_dim):
        kw, kb = jax.random.split(key)
        bound = 1.0 / math.sqrt(in_dim)
        w_t = jax.random.uniform(kw, (in_dim, out_dim), jnp.float32, -bound, bound)
        b = jax.random.uniform(kb, (1, out_dim), jnp.float32, -bound, bound)
        return w_t, b

    k1, k2, k3, k4 = jax.random.split(key, 4)
    wqkv_t, bqkv = linear(k1, EMBED_DIM, 3 * EMBED_DIM)   # qkv_proj
    wo_t, bo = linear(k2, EMBED_DIM, EMBED_DIM)           # output_proj
    w1_t, bf1 = linear(k3, EMBED_DIM, HIDDEN_DIM)         # fc1
    w2_t, bf2 = linear(k4, HIDDEN_DIM, EMBED_DIM)         # fc2
    g1 = jnp.ones((1, EMBED_DIM), jnp.float32)            # LayerNorm defaults
    beta1 = jnp.zeros((1, EMBED_DIM), jnp.float32)
    g2 = jnp.ones((1, EMBED_DIM), jnp.float32)
    beta2 = jnp.zeros((1, EMBED_DIM), jnp.float32)
    return (wqkv_t, bqkv, wo_t, bo, g1, beta1, w1_t, bf1, w2_t, bf2, g2, beta2)


# ---------------------------------------------------------------------------
# plain-JAX f32 reference (mirrors the PyTorch forward, original param layout)
# ---------------------------------------------------------------------------
def reference(x, params):
    (wqkv_t, bqkv, wo_t, bo, g1, beta1, w1_t, bf1, w2_t, bf2, g2, beta2) = params
    B, S, E = x.shape

    def ln(h, gamma, beta):
        mu = jnp.mean(h, axis=-1, keepdims=True)
        var = jnp.mean((h - mu) ** 2, axis=-1, keepdims=True)
        return (h - mu) / jnp.sqrt(var + LN_EPS) * gamma + beta

    qkv = x @ wqkv_t + bqkv                                       # (B,S,3E)
    qkv = qkv.reshape(B, S, NUM_HEADS, 3, HEAD_DIM).transpose(3, 0, 2, 1, 4)
    q, k, v = qkv[0], qkv[1], qkv[2]                              # (B,H,S,Dh)
    s = jnp.einsum("bhqd,bhkd->bhqk", q, k) / math.sqrt(HEAD_DIM)
    p = jax.nn.softmax(s, axis=-1)
    ao = jnp.einsum("bhqk,bhkd->bhqd", p, v)
    ao = ao.transpose(0, 2, 1, 3).reshape(B, S, E) @ wo_t + bo
    h1 = ln(x + ao, g1, beta1)
    ff = jax.nn.gelu(h1 @ w1_t + bf1, approximate=False) @ w2_t + bf2
    return ln(h1 + ff, g2, beta2)


if __name__ == "__main__":
    key = jax.random.PRNGKey(0)
    kx, kp = jax.random.split(key)
    x = jax.random.normal(kx, (BATCH, SEQ, EMBED_DIM), jnp.float32)
    params = init_params(kp)
    w_slab, vec_slab = prepare_params(params)   # one-time reorder / scale fold / packing

    out = jax.block_until_ready(transformer_layer(x, w_slab, vec_slab))
    ref = reference(x, params)

    assert out.shape == (BATCH, SEQ, EMBED_DIM)
    max_err = float(jnp.max(jnp.abs(out - ref)))
    # Tolerance relaxed because the kernel feeds bf16 operands to the MXU and
    # uses the EUP approximate reciprocal (per the performance review); the
    # reference stays pure f32.
    assert jnp.allclose(out, ref, rtol=3e-2, atol=3e-2), \
        f"mismatch vs reference (max |err| = {max_err})"
    print("KERNEL_OK")
</pallas_src>

<mosaic_0001>
module attributes {stable_mosaic.version = 11 : i64} {
  func.func @transformer_layer_kernel(%arg0: memref<16x32xf32, #tpu.memory_space<vmem>>, %arg1: memref<64x544xbf16, #tpu.memory_space<vmem>>, %arg2: memref<24x96xf32, #tpu.memory_space<vmem>>, %arg3: memref<16x32xf32, #tpu.memory_space<vmem>>) attributes {dimension_semantics = [], scalar_prefetch = 0 : i64, scratch_operands = 0 : i64, tpu.core_type = #tpu.core_type<tc>} {
    %c0 = arith.constant 0 : index
    %c0_0 = arith.constant 0 : index
    %0 = vector.load %arg1[%c0, %c0_0] : memref<64x544xbf16, #tpu.memory_space<vmem>>, vector<32x96xbf16>
    %c0_1 = arith.constant 0 : index
    %c128 = arith.constant 128 : index
    %1 = vector.load %arg1[%c0_1, %c128] : memref<64x544xbf16, #tpu.memory_space<vmem>>, vector<32x32xbf16>
    %c0_2 = arith.constant 0 : index
    %c256 = arith.constant 256 : index
    %2 = vector.load %arg1[%c0_2, %c256] : memref<64x544xbf16, #tpu.memory_space<vmem>>, vector<32x64xbf16>
    %c0_3 = arith.constant 0 : index
    %c384 = arith.constant 384 : index
    %3 = vector.load %arg1[%c0_3, %c384] : memref<64x544xbf16, #tpu.memory_space<vmem>>, vector<64x32xbf16>
    %c0_4 = arith.constant 0 : index
    %c512 = arith.constant 512 : index
    %4 = vector.load %arg1[%c0_4, %c512] : memref<64x544xbf16, #tpu.memory_space<vmem>>, vector<64x32xbf16>
    %c0_5 = arith.constant 0 : index
    %c0_6 = arith.constant 0 : index
    %5 = vector.load %arg2[%c0_5, %c0_6] : memref<24x96xf32, #tpu.memory_space<vmem>>, vector<1x96xf32>
    %c1 = arith.constant 1 : index
    %c0_7 = arith.constant 0 : index
    %6 = vector.load %arg2[%c1, %c0_7] : memref<24x96xf32, #tpu.memory_space<vmem>>, vector<1x32xf32>
    %c2 = arith.constant 2 : index
    %c0_8 = arith.constant 0 : index
    %7 = vector.load %arg2[%c2, %c0_8] : memref<24x96xf32, #tpu.memory_space<vmem>>, vector<1x32xf32>
    %c3 = arith.constant 3 : index
    %c0_9 = arith.constant 0 : index
    %8 = vector.load %arg2[%c3, %c0_9] : memref<24x96xf32, #tpu.memory_space<vmem>>, vector<1x32xf32>
    %c4 = arith.constant 4 : index
    %c0_10 = arith.constant 0 : index
    %9 = vector.load %arg2[%c4, %c0_10] : memref<24x96xf32, #tpu.memory_space<vmem>>, vector<1x64xf32>
    %c5 = arith.constant 5 : index
    %c0_11 = arith.constant 0 : index
    %10 = vector.load %arg2[%c5, %c0_11] : memref<24x96xf32, #tpu.memory_space<vmem>>, vector<1x32xf32>
    %c6 = arith.constant 6 : index
    %c0_12 = arith.constant 0 : index
    %11 = vector.load %arg2[%c6, %c0_12] : memref<24x96xf32, #tpu.memory_space<vmem>>, vector<1x32xf32>
    %c7 = arith.constant 7 : index
    %c0_13 = arith.constant 0 : index
    %12 = vector.load %arg2[%c7, %c0_13] : memref<24x96xf32, #tpu.memory_space<vmem>>, vector<1x32xf32>
    %c8 = arith.constant 8 : index
    %c0_14 = arith.constant 0 : index
    %13 = vector.load %arg2[%c8, %c0_14] : memref<24x96xf32, #tpu.memory_space<vmem>>, vector<16x64xf32>
    %c0_15 = arith.constant 0 : index
    %c0_16 = arith.constant 0 : index
    %14 = vector.load %arg0[%c0_15, %c0_16] : memref<16x32xf32, #tpu.memory_space<vmem>>, vector<16x32xf32>
    %15 = arith.truncf %14 : vector<16x32xf32> to vector<16x32xbf16>
    %cst = arith.constant dense<0.000000e+00> : vector<16x96xf32>
    %16 = tpu.matmul %15, %0, %cst {dimension_numbers = #tpu.dot_dimension_numbers<[1], [0], [0], [1], [0, 0, 1, 1], [], []>} : vector<16x32xbf16>, vector<32x96xbf16>, vector<16x96xf32> -> vector<16x96xf32>
    %17 = vector.broadcast %5 : vector<1x96xf32> to vector<16x96xf32>
    %18 = arith.addf %16, %17 : vector<16x96xf32>
    %19 = vector.extract_strided_slice %18 {offsets = [0, 0], sizes = [16, 32], strides = [1, 1]} : vector<16x96xf32> to vector<16x32xf32>
    %20 = arith.truncf %19 : vector<16x32xf32> to vector<16x32xbf16>
    %21 = vector.extract_strided_slice %18 {offsets = [0, 32], sizes = [16, 32], strides = [1, 1]} : vector<16x96xf32> to vector<16x32xf32>
    %22 = arith.truncf %21 : vector<16x32xf32> to vector<16x32xbf16>
    %23 = vector.extract_strided_slice %18 {offsets = [0, 64], sizes = [16, 32], strides = [1, 1]} : vector<16x96xf32> to vector<16x32xf32>
    %24 = arith.truncf %23 : vector<16x32xf32> to vector<16x32xbf16>
    %25 = tpu.concatenate %22, %22, %22, %22 in 0 : vector<16x32xbf16>, vector<16x32xbf16>, vector<16x32xbf16>, vector<16x32xbf16> -> vector<64x32xbf16>
    %26 = arith.mulf %25, %4 : vector<64x32xbf16>
    %27 = tpu.concatenate %24, %24, %24, %24 in 0 : vector<16x32xbf16>, vector<16x32xbf16>, vector<16x32xbf16>, vector<16x32xbf16> -> vector<64x32xbf16>
    %28 = arith.mulf %27, %4 : vector<64x32xbf16>
    %cst_17 = arith.constant dense<0.000000e+00> : vector<16x64xf32>
    %29 = tpu.matmul %20, %26, %cst_17 {dimension_numbers = #tpu.dot_dimension_numbers<[1], [1], [0], [0], [0, 0, 1, 0], [], []>} : vector<16x32xbf16>, vector<64x32xbf16>, vector<16x64xf32> -> vector<16x64xf32>
    %cst_18 = arith.constant dense<0xFF800000> : vector<16xf32>
    %30 = vector.multi_reduction <maximumf>, %29, %cst_18 [1] : vector<16x64xf32> to vector<16xf32>
    %31 = vector.shape_cast %30 : vector<16xf32> to vector<16x1xf32>
    %32 = vector.broadcast %31 : vector<16x1xf32> to vector<16x64xf32>
    %33 = arith.subf %29, %32 : vector<16x64xf32>
    %34 = math.exp %33 : vector<16x64xf32>
    %35 = arith.mulf %34, %13 : vector<16x64xf32>
    %36 = arith.truncf %35 : vector<16x64xf32> to vector<16x64xbf16>
    %cst_19 = arith.constant dense<0.000000e+00> : vector<16x32xf32>
    %37 = tpu.matmul %36, %28, %cst_19 {dimension_numbers = #tpu.dot_dimension_numbers<[1], [0], [0], [1], [0, 0, 1, 1], [], []>} : vector<16x64xbf16>, vector<64x32xbf16>, vector<16x32xf32> -> vector<16x32xf32>
    %cst_20 = arith.constant dense<0.000000e+00> : vector<16x32xf32>
    %38 = tpu.matmul %36, %4, %cst_20 {dimension_numbers = #tpu.dot_dimension_numbers<[1], [0], [0], [1], [0, 0, 1, 1], [], []>} : vector<16x64xbf16>, vector<64x32xbf16>, vector<16x32xf32> -> vector<16x32xf32>
    %39 = tpu.reciprocal %38 {approx = true} : vector<16x32xf32> -> vector<16x32xf32>
    %40 = arith.mulf %37, %39 : vector<16x32xf32>
    %41 = arith.truncf %40 : vector<16x32xf32> to vector<16x32xbf16>
    %cst_21 = arith.constant dense<0.000000e+00> : vector<16x32xf32>
    %42 = tpu.matmul %41, %1, %cst_21 {dimension_numbers = #tpu.dot_dimension_numbers<[1], [0], [0], [1], [0, 0, 1, 1], [], []>} : vector<16x32xbf16>, vector<32x32xbf16>, vector<16x32xf32> -> vector<16x32xf32>
    %43 = vector.broadcast %6 : vector<1x32xf32> to vector<16x32xf32>
    %44 = arith.addf %42, %43 : vector<16x32xf32>
    %45 = arith.addf %14, %44 : vector<16x32xf32>
    %cst_22 = arith.constant dense<0.000000e+00> : vector<16xf32>
    %46 = vector.multi_reduction <add>, %45, %cst_22 [1] : vector<16x32xf32> to vector<16xf32>
    %47 = vector.shape_cast %46 : vector<16xf32> to vector<16x1xf32>
    %cst_23 = arith.constant 3.200000e+01 : f32
    %48 = vector.broadcast %cst_23 : f32 to vector<16x1xf32>
    %49 = arith.divf %47, %48 : vector<16x1xf32>
    %50 = vector.broadcast %49 : vector<16x1xf32> to vector<16x32xf32>
    %51 = arith.subf %45, %50 : vector<16x32xf32>
    %52 = arith.mulf %51, %51 : vector<16x32xf32>
    %cst_24 = arith.constant dense<0.000000e+00> : vector<16xf32>
    %53 = vector.multi_reduction <add>, %52, %cst_24 [1] : vector<16x32xf32> to vector<16xf32>
    %54 = vector.shape_cast %53 : vector<16xf32> to vector<16x1xf32>
    %cst_25 = arith.constant 3.200000e+01 : f32
    %55 = vector.broadcast %cst_25 : f32 to vector<16x1xf32>
    %56 = arith.divf %54, %55 : vector<16x1xf32>
    %57 = vector.broadcast %49 : vector<16x1xf32> to vector<16x32xf32>
    %58 = arith.subf %45, %57 : vector<16x32xf32>
    %cst_26 = arith.constant 9.99999974E-6 : f32
    %59 = vector.broadcast %cst_26 : f32 to vector<16x1xf32>
    %60 = arith.addf %56, %59 : vector<16x1xf32>
    %61 = math.rsqrt %60 : vector<16x1xf32>
    %62 = vector.broadcast %61 : vector<16x1xf32> to vector<16x32xf32>
    %63 = arith.mulf %58, %62 : vector<16x32xf32>
    %64 = vector.broadcast %7 : vector<1x32xf32> to vector<16x32xf32>
    %65 = arith.mulf %63, %64 : vector<16x32xf32>
    %66 = vector.broadcast %8 : vector<1x32xf32> to vector<16x32xf32>
    %67 = arith.addf %65, %66 : vector<16x32xf32>
    %68 = arith.truncf %67 : vector<16x32xf32> to vector<16x32xbf16>
    %cst_27 = arith.constant dense<0.000000e+00> : vector<16x64xf32>
    %69 = tpu.matmul %68, %2, %cst_27 {dimension_numbers = #tpu.dot_dimension_numbers<[1], [0], [0], [1], [0, 0, 1, 1], [], []>} : vector<16x32xbf16>, vector<32x64xbf16>, vector<16x64xf32> -> vector<16x64xf32>
    %70 = vector.broadcast %9 : vector<1x64xf32> to vector<16x64xf32>
    %71 = arith.addf %69, %70 : vector<16x64xf32>
    %cst_28 = arith.constant 5.000000e-01 : f32
    %72 = vector.broadcast %cst_28 : f32 to vector<16x64xf32>
    %73 = arith.mulf %72, %71 : vector<16x64xf32>
    %cst_29 = arith.constant 0.707106769 : f32
    %74 = vector.broadcast %cst_29 : f32 to vector<16x64xf32>
    %75 = arith.mulf %71, %74 : vector<16x64xf32>
    %cst_30 = arith.constant 0.000000e+00 : f32
    %76 = vector.broadcast %cst_30 : f32 to vector<16x64xf32>
    %77 = arith.cmpf oge, %75, %76 : vector<16x64xf32>
    %cst_31 = arith.constant 1.000000e+00 : f32
    %cst_32 = arith.constant -1.000000e+00 : f32
    %78 = vector.broadcast %cst_31 : f32 to vector<16x64xf32>
    %79 = vector.broadcast %cst_32 : f32 to vector<16x64xf32>
    %80 = arith.select %77, %78, %79 : vector<16x64xi1>, vector<16x64xf32>
    %81 = math.absf %75 : vector<16x64xf32>
    %cst_33 = arith.constant 0.327591091 : f32
    %82 = vector.broadcast %cst_33 : f32 to vector<16x64xf32>
    %83 = arith.mulf %82, %81 : vector<16x64xf32>
    %cst_34 = arith.constant 1.000000e+00 : f32
    %84 = vector.broadcast %cst_34 : f32 to vector<16x64xf32>
    %85 = arith.addf %84, %83 : vector<16x64xf32>
    %cst_35 = arith.constant 1.000000e+00 : f32
    %86 = vector.broadcast %cst_35 : f32 to vector<16x64xf32>
    %87 = arith.divf %86, %85 : vector<16x64xf32>
    %cst_36 = arith.constant 1.06140542 : f32
    %88 = vector.broadcast %cst_36 : f32 to vector<16x64xf32>
    %89 = arith.mulf %88, %87 : vector<16x64xf32>
    %cst_37 = arith.constant -1.45315206 : f32
    %90 = vector.broadcast %cst_37 : f32 to vector<16x64xf32>
    %91 = arith.addf %89, %90 : vector<16x64xf32>
    %92 = arith.mulf %91, %87 : vector<16x64xf32>
    %cst_38 = arith.constant 1.42141378 : f32
    %93 = vector.broadcast %cst_38 : f32 to vector<16x64xf32>
    %94 = arith.addf %92, %93 : vector<16x64xf32>
    %95 = arith.mulf %94, %87 : vector<16x64xf32>
    %cst_39 = arith.constant -0.284496725 : f32
    %96 = vector.broadcast %cst_39 : f32 to vector<16x64xf32>
    %97 = arith.addf %95, %96 : vector<16x64xf32>
    %98 = arith.mulf %97, %87 : vector<16x64xf32>
    %cst_40 = arith.constant 0.254829586 : f32
    %99 = vector.broadcast %cst_40 : f32 to vector<16x64xf32>
    %100 = arith.addf %98, %99 : vector<16x64xf32>
    %101 = arith.mulf %100, %87 : vector<16x64xf32>
    %cst_41 = arith.constant 0.000000e+00 : f32
    %102 = vector.broadcast %cst_41 : f32 to vector<16x64xf32>
    %103 = arith.subf %102, %81 : vector<16x64xf32>
    %104 = arith.mulf %103, %81 : vector<16x64xf32>
    %105 = math.exp %104 : vector<16x64xf32>
    %106 = arith.mulf %101, %105 : vector<16x64xf32>
    %cst_42 = arith.constant 1.000000e+00 : f32
    %107 = vector.broadcast %cst_42 : f32 to vector<16x64xf32>
    %108 = arith.subf %107, %106 : vector<16x64xf32>
    %109 = arith.mulf %80, %108 : vector<16x64xf32>
    %cst_43 = arith.constant 1.000000e+00 : f32
    %110 = vector.broadcast %cst_43 : f32 to vector<16x64xf32>
    %111 = arith.addf %110, %109 : vector<16x64xf32>
    %112 = arith.mulf %73, %111 : vector<16x64xf32>
    %113 = arith.truncf %112 : vector<16x64xf32> to vector<16x64xbf16>
    %cst_44 = arith.constant dense<0.000000e+00> : vector<16x32xf32>
    %114 = tpu.matmul %113, %3, %cst_44 {dimension_numbers = #tpu.dot_dimension_numbers<[1], [0], [0], [1], [0, 0, 1, 1], [], []>} : vector<16x64xbf16>, vector<64x32xbf16>, vector<16x32xf32> -> vector<16x32xf32>
    %115 = vector.broadcast %10 : vector<1x32xf32> to vector<16x32xf32>
    %116 = arith.addf %114, %115 : vector<16x32xf32>
    %117 = arith.addf %67, %116 : vector<16x32xf32>
    %cst_45 = arith.constant dense<0.000000e+00> : vector<16xf32>
    %118 = vector.multi_reduction <add>, %117, %cst_45 [1] : vector<16x32xf32> to vector<16xf32>
    %119 = vector.shape_cast %118 : vector<16xf32> to vector<16x1xf32>
    %cst_46 = arith.constant 3.200000e+01 : f32
    %120 = vector.broadcast %cst_46 : f32 to vector<16x1xf32>
    %121 = arith.divf %119, %120 : vector<16x1xf32>
    %122 = vector.broadcast %121 : vector<16x1xf32> to vector<16x32xf32>
    %123 = arith.subf %117, %122 : vector<16x32xf32>
    %124 = arith.mulf %123, %123 : vector<16x32xf32>
    %cst_47 = arith.constant dense<0.000000e+00> : vector<16xf32>
    %125 = vector.multi_reduction <add>, %124, %cst_47 [1] : vector<16x32xf32> to vector<16xf32>
    %126 = vector.shape_cast %125 : vector<16xf32> to vector<16x1xf32>
    %cst_48 = arith.constant 3.200000e+01 : f32
    %127 = vector.broadcast %cst_48 : f32 to vector<16x1xf32>
    %128 = arith.divf %126, %127 : vector<16x1xf32>
    %129 = vector.broadcast %121 : vector<16x1xf32> to vector<16x32xf32>
    %130 = arith.subf %117, %129 : vector<16x32xf32>
    %cst_49 = arith.constant 9.99999974E-6 : f32
    %131 = vector.broadcast %cst_49 : f32 to vector<16x1xf32>
    %132 = arith.addf %128, %131 : vector<16x1xf32>
    %133 = math.rsqrt %132 : vector<16x1xf32>
    %134 = vector.broadcast %133 : vector<16x1xf32> to vector<16x32xf32>
    %135 = arith.mulf %130, %134 : vector<16x32xf32>
    %136 = vector.broadcast %11 : vector<1x32xf32> to vector<16x32xf32>
    %137 = arith.mulf %135, %136 : vector<16x32xf32>
    %138 = vector.broadcast %12 : vector<1x32xf32> to vector<16x32xf32>
    %139 = arith.addf %137, %138 : vector<16x32xf32>
    %c0_50 = arith.constant 0 : index
    %c0_51 = arith.constant 0 : index
    %140 = vector.load %arg3[%c0_50, %c0_51] : memref<16x32xf32, #tpu.memory_space<vmem>>, vector<16x32xf32>
    tpu.vector_store %arg3[%c0_50, %c0_51], %139 {strides = array<i32>} : memref<16x32xf32, #tpu.memory_space<vmem>>, vector<16x32xf32>,
    return
  }
}

</mosaic_0001>

<bundles_post_ra>
// kernel: transformer_layer.1
= control target key start
LH: loop header
LB: loop body
LE: loop exit
PB: predicated region body
PF: predicated region fallthrough
CT: control target
= control target key end

     0   :  { %8 = vsyncpa [#allocation3], 0  ;;  %s1225_s0 = inlined_call_operand.hbm [shape: f32[16,32], index: 0, kind: input, shape index: {}]   ;;  %s1226_s1 = inlined_call_operand.hbm [shape: bf16[64,544], index: 1, kind: input, shape index: {}]   ;;  %s1227_s2 = inlined_call_operand.hbm [shape: f32[24,96], index: 2, kind: input, shape index: {}]   ;;  %s1228_s3 = inlined_call_operand.hbm [shape: f32[16,32], index: 3, kind: output, shape index: {}]  }
   0x1   :  { %9 = vsyncpa [#allocation6], 0 }
   0x2   :  { %10 = vsyncpa [#allocation4], 0  ;;  %s1031_s12 = smov [#allocation5]   ;;  %s937_s16 = scalar_lea.hbm %s1226_s1, 2560 }
   0x3   :  { %s28_s13 = sshll.u32 %s1031_s12, 4  ;;  %p938_p0 = scmp.ne.s32.totalorder %s1226_s1, %s937_s16  ;;  %s29_s13 = int_to_ptr.vmem [resolvable:$true] %s28_s13 }
   0x4   :  { %p941_p1 = scmp.lt.u32.totalorder %s937_s16, %s1226_s1 }
   0x6   :  { %p943_p2 = pnand %p941_p1, %p938_p0 }
   0x8   :  { %946 = shalt.err (!%p943_p2)
}
   0x9   :  { %s947_s21 = scalar_lea.vmem %s29_s13, 2560  ;;  %p952_p4 = scmp.lt.s32.totalorder %s29_s13, %s29_s13 }
   0xa   :  { %p948_p3 = scmp.ne.s32.totalorder %s29_s13, %s947_s21  ;;  %p953_p5 = scmp.lt.s32.totalorder %s947_s21, %s947_s21 }
   0xc   :  { %p954_p6 = por %p953_p5, %p952_p4 }
   0xe   :  { %p955_p7 = pnand %p954_p6, %p948_p3 }
  0x10   :  { %958 = shalt.err (!%p955_p7)
}
  0x11   :  { %s1032_s22 = smov 320   ;;  %s1033_s23 = smov 20  }
  0x12   :  { %34 = dma.hbm_to_vmem [thread:$0]  %s1226_s1, 2560, %s29_s13, [#allocation6], %s1032_s22, %s1032_s22, %s1033_s23  }
  0x13   :  { %s1034_s26 = smov [#allocation2]   ;;  %s959_s30 = scalar_lea.hbm %s1225_s0, 256 }
  0x14   :  { %s16_s27 = sshll.u32 %s1034_s26, 4  ;;  %p960_p8 = scmp.ne.s32.totalorder %s1225_s0, %s959_s30  ;;  %s17_s27 = int_to_ptr.vmem [resolvable:$true] %s16_s27 }
  0x15   :  { %p963_p9 = scmp.lt.u32.totalorder %s959_s30, %s1225_s0 }
  0x17   :  { %p965_p10 = pnand %p963_p9, %p960_p8 }
  0x19   :  { %968 = shalt.err (!%p965_p10)
}
  0x1a   :  { %s969_s8 = scalar_lea.vmem %s17_s27, 256  ;;  %p974_p12 = scmp.lt.s32.totalorder %s17_s27, %s17_s27 }
  0x1b   :  { %p970_p11 = scmp.ne.s32.totalorder %s17_s27, %s969_s8  ;;  %p975_p13 = scmp.lt.s32.totalorder %s969_s8, %s969_s8 }
  0x1d   :  { %p976_p0 = por %p975_p13, %p974_p12 }
  0x1f   :  { %p977_p1 = pnand %p976_p0, %p970_p11 }
  0x21   :  { %980 = shalt.err (!%p977_p1)
}
  0x22   :  { %s1035_s1 = smov 128   ;;  %s1036_s9 = smov 8  }
  0x23   :  { %22 = dma.hbm_to_vmem [thread:$0]  %s1225_s0, 256, %s17_s27, [#allocation3], %s1035_s1, %s1035_s1, %s1036_s9  }
  0x24   :  { %s1037_s12 = smov [#allocation7]   ;;  %s981_s16 = scalar_lea.hbm %s1227_s2, 384 }
  0x25   :  { %s40_s13 = sshll.u32 %s1037_s12, 4  ;;  %p982_p2 = scmp.ne.s32.totalorder %s1227_s2, %s981_s16  ;;  %s41_s13 = int_to_ptr.vmem [resolvable:$true] %s40_s13 }
  0x26   :  { %p985_p3 = scmp.lt.u32.totalorder %s981_s16, %s1227_s2 }
  0x28   :  { %p987_p4 = pnand %p985_p3, %p982_p2 }
  0x2a   :  { %990 = shalt.err (!%p987_p4)
}
  0x2b   :  { %s991_s21 = scalar_lea.vmem %s41_s13, 384  ;;  %p996_p6 = scmp.lt.s32.totalorder %s41_s13, %s41_s13 }
  0x2c   :  { %p992_p5 = scmp.ne.s32.totalorder %s41_s13, %s991_s21  ;;  %p997_p7 = scmp.lt.s32.totalorder %s991_s21, %s991_s21 }
  0x2e   :  { %p998_p8 = por %p997_p7, %p996_p6 }
  0x30   :  { %p999_p9 = pnand %p998_p8, %p992_p5 }
  0x32   :  { %1002 = shalt.err (!%p999_p9)
}
  0x33   :  { %46 = dma.hbm_to_vmem [thread:$0]  %s1227_s2, 384, %s41_s13, [#allocation6], %s1035_s1, %s1035_s1, %s1036_s9  }
  0x34   :  { %1025 = dma.done.wait [#allocation3], 256  }
  0x35   :  { %1026 = vsyncadd [#allocation3], 4294967040 }
  0x36   :  { %1027 = dma.done.wait [#allocation6], 2944  }
  0x37   :  { %1028 = vsyncadd [#allocation6], 4294964352  ;;  %v1038_v0 = vmov 0.0   ;;  %vm1039_vm0 = vmmov 0   ;;  %v899_v1 = vld [vmem:[#allocation5] ss:$20 sps:$4 sm:$0xff]  }
  0x38   :  { %813 = vmatprep.subr.bf16.mxu0 %v1038_v0  ;;  %817 = vmatprep.mubr.msk.bf16.mxu0 %vm1039_vm0, %v1038_v0  ;;  %v900_v2 = vld [vmem:[#allocation5 + $0x28] ss:$20 sps:$4 sm:$0xff]   ;;  %v1113_v3 = vld [vmem:[#allocation2] sm:$0xff]  ;;  %s1040_s2 = smov 32   ;;  %vm114_vm1 = vcmask 261120   ;;  %s1041_s23 = smov 96  }
  0x39   :  { %821 = vmatprep.subr.bf16.mxu1 %v1038_v0  ;;  %829 = vmatprep.mubr.msk.bf16.mxu1 %vm1039_vm0, %v1038_v0  ;;  %v1115_v4 = vld [vmem:[#allocation2 + $0x8] sm:$0xff]  ;;  %v1118_v5 = vld [vmem:[#allocation5 + $0x60] ss:$20 sps:$4 sm:$0xff]   ;;  %v1120_v6 = vld [vmem:[#allocation5 + $0x10] ss:$20 sps:$4 sm:$0xff]   ;;  %s1042_s24 = smov 64  }
  0x3a   :  { %814 = vmatpush3.bf16.msra.mxu0 %v899_v1  ;;  %v97_v7 = vpack.c.bf16 %v1115_v4, %v1113_v3  ;;  %184 = vrot.lane.b32.xlu1 %v1118_v5, %s1040_s2  ;;  %v1125_v8 = vld [vmem:[#allocation5 + $0x88] ss:$20 sps:$4 sm:$0xff]   ;;  %v1128_v9 = vld [vmem:[#allocation5 + $0x38] ss:$20 sps:$4 sm:$0xff]   ;;  %v755_v11 = vld [vmem:[#allocation7] ss:$0 sm:$0xff] }
  0x3b   :  { %815 = vmatprep.subr.bf16.mxu0 %v1038_v0  ;;  %180 = vrot.lane.b32.xlu0 %v1120_v6, %s1040_s2  ;;  %vm280_vm2 = vcmask 523264   ;;  %v93_v59 = vld [vmem:[#allocation7 + $0x8] sm:$0xff]  ;;  %v94_v60 = vld [vmem:[#allocation7 + $0x10] sm:$0xff]  ;;  %s1044_s25 = smov [#allocation8]  }
  0x3c   :  { %s742_s26 = sshll.u32 %s1044_s25, 4  ;;  %s743_s26 = int_to_ptr.vmem [resolvable:$true] %s742_s26 }
  0x3d   :  { %s1003_s27 = scalar_lea.vmem %s743_s26, 256  ;;  %p1008_p11 = scmp.lt.s32.totalorder %s743_s26, %s743_s26 }
  0x3e   :  { %816 = vmatpush3.bf16.msra.mxu0 %v900_v2  ;;  %186 = vrot.lane.b32.xlu1 %v1125_v8, %s1040_s2  ;;  %v905_v2 = vld [vmem:[#allocation5 + $0x4] ss:$20 sps:$4 sm:$0xff]   ;;  %p1004_p10 = scmp.ne.s32.totalorder %s743_s26, %s1003_s27  ;;  %p1009_p12 = scmp.lt.s32.totalorder %s1003_s27, %s1003_s27 }
  0x3f   :  { %833 = vmatprep.subr.bf16.mxu0 %v1038_v0  ;;  %182 = vrot.lane.b32.xlu0 %v1128_v9, %s1040_s2 }
  0x40   :  { %p1010_p13 = por %p1009_p12, %p1008_p11 }
  0x41   :  { %818 = vmatmul.mubr.msk.bf16.vlgmr.msra.gmra.mrb[0].mxu0 %vm114_vm1, %v97_v7 }
  0x42   :  { %841 = vmatprep.mubr.msk.bf16.mxu0 %vm1039_vm0, %v1038_v0  ;;  %p1011_p0 = pnand %p1010_p13, %p1004_p10 }
  0xac   :  { %v185_v14 = vpop.permute.xlu1 %184 }
  0xad   :  { %v181_v10 = vpop.permute.xlu0 %180 }
  0xb0   :  { %v187_v23 = vpop.permute.xlu1 %186 }
  0xb1   :  { %v183_v19 = vpop.permute.xlu0 %182 }
 0x114   :  { %v152_v12 = vpop.f32.mrb[0].mxu0 }
 0x115   :  { %v819_v13 = vpop.f32.mrb[1].mxu0  ;;  %v153_v16 = vadd.f32 %v755_v11, %v152_v12 }
 0x116   :  { %v155_v15 = vpop.f32.mrb[2].mxu0 }
 0x117   :  { %v156_v17 = vadd.f32 %v755_v11, %v155_v15  ;;  %v820_v18 = vpop.f32.mrb[3].mxu0 }
 0x119   :  { %v159_v20 = vpack.c.bf16 %v156_v17, %v153_v16 }
 0x11b   :  { %v193_v21 = vmul.bf16 %v183_v19, %v159_v20  ;;  %v192_v22 = vmul.bf16 %v181_v10, %v159_v20  ;;  %v195_v24 = vmul.bf16 %v187_v23, %v159_v20  ;;  %v194_v25 = vmul.bf16 %v185_v14, %v159_v20  ;;  %v766_v19 = vld [vmem:[#allocation7 + $0x1] ss:$0 sm:$0xff] }
 0x11d   :  { %218 = vrot.lane.b32.xlu1 %v193_v21, %s1041_s23  ;;  %216 = vrot.lane.b32.xlu0 %v192_v22, %s1041_s23 }
 0x121   :  { %222 = vrot.lane.b32.xlu1 %v195_v24, %s1041_s23  ;;  %220 = vrot.lane.b32.xlu0 %v194_v25, %s1041_s23 }
 0x125   :  { %198 = vrot.lane.b32.xlu1 %v1128_v9, %s1042_s24  ;;  %196 = vrot.lane.b32.xlu0 %v1120_v6, %s1042_s24 }
 0x129   :  { %202 = vrot.lane.b32.xlu1 %v1125_v8, %s1042_s24  ;;  %200 = vrot.lane.b32.xlu0 %v1118_v5, %s1042_s24 }
 0x18f   :  { %v219_v26 = vpop.permute.xlu1 %218  ;;  %v217_v27 = vpop.permute.xlu0 %216 }
 0x190   :  { %v228_v28 = vsel %vm114_vm1, %v217_v27, 0  ;;  %v231_v33 = vsel %vm114_vm1, %v219_v26, 0 }
 0x191   :  { %822 = vmatpush3.bf16.xpose.msra.mxu1 %v228_v28 }
 0x192   :  { %823 = vmatprep.subr.bf16.mxu1 %v1038_v0 }
 0x193   :  { %v223_v29 = vpop.permute.xlu1 %222  ;;  %v221_v30 = vpop.permute.xlu0 %220 }
 0x194   :  { %v234_v36 = vsel %vm114_vm1, %v221_v30, 0  ;;  %v237_v37 = vsel %vm114_vm1, %v223_v29, 0 }
 0x197   :  { %v199_v31 = vpop.permute.xlu1 %198  ;;  %v197_v32 = vpop.permute.xlu0 %196 }
 0x198   :  { %v209_v34 = vmul.bf16 %v199_v31, %v159_v20  ;;  %v208_v35 = vmul.bf16 %v197_v32, %v159_v20 }
 0x199   :  { %824 = vmatpush3.bf16.xpose.msra.mxu1 %v231_v33 }
 0x19a   :  { %302 = vrot.lane.b32.xlu1 %v209_v34, %s1042_s24  ;;  %300 = vrot.lane.b32.xlu0 %v208_v35, %s1042_s24 }
 0x19b   :  { %825 = vmatprep.subr.bf16.mxu1 %v1038_v0  ;;  %v201_v38 = vpop.permute.xlu0 %200  ;;  %v203_v39 = vpop.permute.xlu1 %202 }
 0x19c   :  { %v211_v48 = vmul.bf16 %v203_v39, %v159_v20  ;;  %v210_v49 = vmul.bf16 %v201_v38, %v159_v20  ;;  %v907_v39 = vld [vmem:[#allocation5 + $0x8] ss:$20 sps:$4 sm:$0xff]  }
 0x1a1   :  { %826 = vmatpush3.bf16.xpose.msra.mxu1 %v234_v36 }
 0x1a2   :  { %827 = vmatprep.subr.bf16.mxu1 %v1038_v0 }
 0x1a9   :  { %828 = vmatpush3.bf16.xpose.msra.mxu1 %v237_v37 }
 0x1aa   :  { %857 = vmatprep.subr.bf16.mxu1 %v1038_v0 }
 0x1b0   :  { %830 = vmatmul.mubr.msk.bf16.vlgmr.msra.gmra.mrb[0].mxu1 %vm114_vm1, %v159_v20 }
 0x1b1   :  { %861 = vmatprep.mubr.msk.bf16.mxu1 %vm1039_vm0, %v1038_v0  ;;  %858 = vmatpush3.bf16.msra.mxu1 %v905_v2 }
 0x1b2   :  { %859 = vmatprep.subr.bf16.mxu1 %v1038_v0 }
 0x20c   :  { %v301_v40 = vpop.permute.xlu0 %300  ;;  %v303_v41 = vpop.permute.xlu1 %302 }
 0x20d   :  { %834 = vmatpush3.bf16.msra.mxu0 %v301_v40 }
 0x20e   :  { %835 = vmatprep.subr.bf16.mxu0 %v1038_v0 }
 0x211   :  { %836 = vmatpush3.bf16.msra.mxu0 %v303_v41 }
 0x212   :  { %837 = vmatprep.subr.bf16.mxu0 %v1038_v0 }
 0x283   :  { %v273_v42 = vpop.f32.mrb[0].mxu1 }
 0x284   :  { %v831_v43 = vpop.f32.mrb[1].mxu1  ;;  %v281_v44 = vsel %vm280_vm2, %v273_v42, -inf }
 0x285   :  { %v276_v45 = vpop.f32.mrb[2].mxu1  ;;  %282 = vmax.xlane.f32.xlu0 %v281_v44 }
 0x286   :  { %v832_v46 = vpop.f32.mrb[3].mxu1  ;;  %v284_v47 = vsel %vm280_vm2, %v276_v45, -inf }
 0x287   :  { %285 = vmax.xlane.f32.xlu1 %v284_v47 }
 0x298   :  { %306 = vrot.lane.b32.xlu1 %v211_v48, %s1042_s24  ;;  %v770_v48 = vld [vmem:[#allocation7 + $0x2] ss:$0 sm:$0xff] }
 0x29b   :  { %304 = vrot.lane.b32.xlu0 %v210_v49, %s1042_s24 }
 0x312   :  { %v283_v50 = vpop.xlane.xlu0 %282 }
 0x313   :  { %v287_v51 = vsub.f32 %v273_v42, %v283_v50 }
 0x314   :  { %v286_v52 = vpop.xlane.xlu1 %285 }
 0x315   :  { %v289_v53 = vmul.f32 1.442695, %v287_v51  ;;  %v288_v54 = vsub.f32 %v276_v45, %v286_v52  ;;  %v771_v52 = vld [vmem:[#allocation7 + $0x3] ss:$0 sm:$0xff] }
 0x316   :  { %v305_v55 = vpop.permute.xlu0 %304 }
 0x317   :  { %913 = vpow2.f32 %v289_v53  ;;  %v291_v56 = vmul.f32 1.442695, %v288_v54  ;;  %838 = vmatpush3.bf16.msra.mxu0 %v305_v55 }
 0x318   :  { %839 = vmatprep.subr.bf16.mxu0 %v1038_v0  ;;  %v307_v57 = vpop.permute.xlu1 %306 }
 0x319   :  { %915 = vpow2.f32 %v291_v56 }
 0x31b   :  { %840 = vmatpush3.bf16.msra.mxu0 %v307_v57  ;;  %v909_v57 = vld [vmem:[#allocation5 + $0xc] ss:$20 sps:$4 sm:$0xff]  }
 0x31c   :  { %845 = vmatprep.subr.bf16.mxu0 %v1038_v0 }
 0x321   :  { %v914_v58 = vpop.eup %913 }
 0x322   :  { %v293_v62 = vmul.f32 %v914_v58, %v93_v59  ;;  %v910_v58 = vld [vmem:[#allocation5 + $0x34] ss:$20 sps:$4 sm:$0xff]   ;;  %v911_v59 = vld [vmem:[#allocation5 + $0x5c] ss:$20 sps:$4 sm:$0xff]  }
 0x323   :  { %v916_v61 = vpop.eup %915 }
 0x324   :  { %v294_v63 = vmul.f32 %v916_v61, %v94_v60  ;;  %v912_v60 = vld [vmem:[#allocation5 + $0x84] ss:$20 sps:$4 sm:$0xff]  }
 0x325   :  { %v772_v61 = vld [vmem:[#allocation7 + $0x4] ss:$0 sm:$0xff] }
 0x326   :  { %v295_v1 = vpack.c.bf16 %v294_v63, %v293_v62 }
 0x328   :  { %842 = vmatmul.mubr.msk.bf16.vlgmr.msra.gmra.mrb[4].mxu0 %vm280_vm2, %v295_v1 }
 0x329   :  { %846 = vmatpush3.bf16.msra.mxu0 %v1120_v6  ;;  %853 = vmatprep.mubr.msk.bf16.mxu0 %vm1039_vm0, %v1038_v0  ;;  %v906_v6 = vld [vmem:[#allocation5 + $0x2c] ss:$20 sps:$4 sm:$0xff]  }
 0x32a   :  { %847 = vmatprep.subr.bf16.mxu0 %v1038_v0  ;;  %860 = vmatpush3.bf16.msra.mxu1 %v906_v6 }
 0x32b   :  { %873 = vmatprep.subr.bf16.mxu1 %v1038_v0 }
 0x32d   :  { %848 = vmatpush3.bf16.msra.mxu0 %v1128_v9 }
 0x32e   :  { %849 = vmatprep.subr.bf16.mxu0 %v1038_v0 }
 0x331   :  { %850 = vmatpush3.bf16.msra.mxu0 %v1118_v5 }
 0x332   :  { %851 = vmatprep.subr.bf16.mxu0 %v1038_v0 }
 0x335   :  { %852 = vmatpush3.bf16.msra.mxu0 %v1125_v8 }
 0x336   :  { %865 = vmatprep.subr.bf16.mxu0 %v1038_v0 }
 0x338   :  { %854 = vmatmul.mubr.msk.bf16.vlgmr.msra.gmra.mrb[8].mxu0 %vm280_vm2, %v295_v1 }
 0x339   :  { %869 = vmatprep.mubr.msk.bf16.mxu0 %vm1039_vm0, %v1038_v0  ;;  %866 = vmatpush3.bf16.msra.mxu0 %v907_v39 }
 0x33a   :  { %867 = vmatprep.subr.bf16.mxu0 %v1038_v0 }
 0x3fb   :  { %v349_v5 = vpop.f32.mrb[4].mxu0 }
 0x3fc   :  { %v843_v7 = vpop.f32.mrb[5].mxu0 }
 0x3fd   :  { %v352_v9 = vpop.f32.mrb[6].mxu0 }
 0x3fe   :  { %v844_v10 = vpop.f32.mrb[7].mxu0 }
 0x40b   :  { %v394_v8 = vpop.f32.mrb[8].mxu0 }
 0x40c   :  { %917 = vrcp.f32 %v394_v8  ;;  %v855_v11 = vpop.f32.mrb[9].mxu0 }
 0x40d   :  { %v397_v12 = vpop.f32.mrb[10].mxu0 }
 0x40e   :  { %919 = vrcp.f32 %v397_v12  ;;  %v856_v13 = vpop.f32.mrb[11].mxu0 }
 0x416   :  { %v918_v14 = vpop.eup %917 }
 0x417   :  { %v403_v15 = vmul.f32 %v918_v14, %v349_v5 }
 0x418   :  { %v920_v16 = vpop.eup %919 }
 0x419   :  { %v404_v17 = vmul.f32 %v920_v16, %v352_v9 }
 0x41b   :  { %v405_v18 = vpack.c.bf16 %v404_v17, %v403_v15 }
 0x41d   :  { %862 = vmatmul.mubr.msk.bf16.vlgmr.msra.gmra.mrb[4].mxu1 %vm114_vm1, %v405_v18 }
 0x41e   :  { %881 = vmatprep.mubr.msk.bf16.mxu1 %vm1039_vm0, %v1038_v0  ;;  %874 = vmatpush3.bf16.msra.mxu1 %v909_v57 }
 0x41f   :  { %875 = vmatprep.subr.bf16.mxu1 %v1038_v0 }
 0x422   :  { %876 = vmatpush3.bf16.msra.mxu1 %v910_v58  ;;  %v776_v58 = vld [vmem:[#allocation7 + $0x5] ss:$0 sm:$0xff] }
 0x423   :  { %877 = vmatprep.subr.bf16.mxu1 %v1038_v0 }
 0x426   :  { %878 = vmatpush3.bf16.msra.mxu1 %v911_v59 }
 0x427   :  { %879 = vmatprep.subr.bf16.mxu1 %v1038_v0 }
 0x42a   :  { %880 = vmatpush3.bf16.msra.mxu1 %v912_v60 }
 0x4f0   :  { %v459_v20 = vpop.f32.mrb[4].mxu1 }
 0x4f1   :  { %v460_v21 = vadd.f32 %v766_v19, %v459_v20  ;;  %v863_v22 = vpop.f32.mrb[5].mxu1 }
 0x4f2   :  { %v462_v23 = vpop.f32.mrb[6].mxu1 }
 0x4f3   :  { %v463_v24 = vadd.f32 %v766_v19, %v462_v23  ;;  %v864_v25 = vpop.f32.mrb[7].mxu1  ;;  %v466_v26 = vadd.f32 %v460_v21, %v1113_v3 }
 0x4f5   :  { %v468_v27 = vsel %vm114_vm1, %v466_v26, 0.0  ;;  %v467_v28 = vadd.f32 %v463_v24, %v1115_v4  ;;  %v908_v4 = vld [vmem:[#allocation5 + $0x30] ss:$20 sps:$4 sm:$0xff]  }
 0x4f6   :  { %469 = vadd.xlane.f32.xlu0 %v468_v27  ;;  %868 = vmatpush3.bf16.msra.mxu0 %v908_v4 }
 0x4f7   :  { %v471_v29 = vsel %vm114_vm1, %v467_v28, 0.0 }
 0x4f8   :  { %472 = vadd.xlane.f32.xlu1 %v471_v29 }
 0x583   :  { %v470_v30 = vpop.xlane.xlu0 %469 }
 0x584   :  { %v475_v31 = vmul.f32 0.03125, %v470_v30 }
 0x585   :  { %v473_v32 = vpop.xlane.xlu1 %472 }
 0x586   :  { %v477_v33 = vsub.f32 %v466_v26, %v475_v31  ;;  %v476_v34 = vmul.f32 0.03125, %v473_v32 }
 0x588   :  { %v478_v35 = vsub.f32 %v467_v28, %v476_v34  ;;  %v479_v36 = vmul.f32 %v477_v33, %v477_v33 }
 0x58a   :  { %v481_v37 = vsel %vm114_vm1, %v479_v36, 0.0  ;;  %v480_v38 = vmul.f32 %v478_v35, %v478_v35 }
 0x58b   :  { %482 = vadd.xlane.f32.xlu0 %v481_v37 }
 0x58c   :  { %v484_v3 = vsel %vm114_vm1, %v480_v38, 0.0 }
 0x58f   :  { %485 = vadd.xlane.f32.xlu0 %v484_v3 }
 0x618   :  { %v483_v40 = vpop.xlane.xlu0 %482 }
 0x619   :  { %v487_v41 = vmul.f32 0.03125, %v483_v40 }
 0x61b   :  { %v489_v42 = vadd.f32 1e-05, %v487_v41 }
 0x61c   :  { %v486_v43 = vpop.xlane.xlu0 %485 }
 0x61d   :  { %921 = vrsqrt.f32 %v489_v42  ;;  %v488_v44 = vmul.f32 0.03125, %v486_v43  ;;  %v1043_v42 = vmov -1.0  }
 0x61f   :  { %v490_v45 = vadd.f32 1e-05, %v488_v44 }
 0x621   :  { %923 = vrsqrt.f32 %v490_v45 }
 0x627   :  { %v922_v46 = vpop.eup %921 }
 0x628   :  { %v493_v47 = vmul.f32 %v922_v46, %v477_v33 }
 0x62a   :  { %v499_v50 = vmul.f32 %v770_v48, %v493_v47 }
 0x62b   :  { %v924_v49 = vpop.eup %923 }
 0x62c   :  { %v494_v51 = vmul.f32 %v924_v49, %v478_v35  ;;  %v1191_v54 = vadd.f32 %v771_v52, %v499_v50 }
 0x62e   :  { %v500_v53 = vmul.f32 %v770_v48, %v494_v51 }
 0x630   :  { %v1193_v55 = vadd.f32 %v771_v52, %v500_v53 }
 0x632   :  { %v507_v56 = vpack.c.bf16 %v1193_v55, %v1191_v54 }
 0x634   :  { %870 = vmatmul.mubr.msk.bf16.vlgmr.msra.gmra.mrb[12].mxu0 %vm114_vm1, %v507_v56 }
 0x707   :  { %v561_v62 = vpop.f32.mrb[12].mxu0 }
 0x708   :  { %v562_v63 = vadd.f32 %v772_v61, %v561_v62  ;;  %v871_v1 = vpop.f32.mrb[13].mxu0 }
 0x709   :  { %v564_v2 = vpop.f32.mrb[14].mxu0 }
 0x70a   :  { %v570_v6 = vmul.f32 0.70710677, %v562_v63  ;;  %v565_v5 = vadd.f32 %v772_v61, %v564_v2  ;;  %v872_v7 = vpop.f32.mrb[15].mxu0  ;;  %v568_v50 = vmul.f32 0.5, %v562_v63 }
 0x70c   :  { %v576_v9 = vand.u32 2147483647, %v570_v6  ;;  %v571_v10 = vmul.f32 0.70710677, %v565_v5  ;;  %vm572_vm3 = vcmp.ge.f32.partialorder %v570_v6, 0.0  ;;  %v569_v51 = vmul.f32 0.5, %v565_v5 }
 0x70d   :  { %v574_v43 = vsel %vm572_vm3, 1.0, %v1043_v42 }
 0x70e   :  { %v578_v8 = vmul.f32 0.3275911, %v576_v9  ;;  %v577_v11 = vand.u32 2147483647, %v571_v10  ;;  %v604_v0 = vsub.f32 0.0, %v576_v9  ;;  %vm573_vm4 = vcmp.ge.f32.partialorder %v571_v10, 0.0 }
 0x70f   :  { %v575_v47 = vsel %vm573_vm4, 1.0, %v1043_v42 }
 0x710   :  { %v580_v12 = vadd.f32 1.0, %v578_v8  ;;  %v579_v13 = vmul.f32 0.3275911, %v577_v11  ;;  %v605_v15 = vsub.f32 0.0, %v577_v11  ;;  %v606_v17 = vmul.f32 %v604_v0, %v576_v9 }
 0x712   :  { %925 = vrcp.f32 %v580_v12  ;;  %v581_v14 = vadd.f32 1.0, %v579_v13  ;;  %v607_v21 = vmul.f32 %v605_v15, %v577_v11  ;;  %v608_v22 = vmul.f32 1.442695, %v606_v17 }
 0x714   :  { %927 = vrcp.f32 %v581_v14  ;;  %v610_v27 = vmul.f32 1.442695, %v607_v21 }
 0x715   :  { %929 = vpow2.f32 %v608_v22  ;;  %v782_v22 = vld [vmem:[#allocation7 + $0x6] ss:$0 sm:$0xff] }
 0x716   :  { %931 = vpow2.f32 %v610_v27 }
 0x71c   :  { %v926_v16 = vpop.eup %925 }
 0x71d   :  { %v586_v18 = vmul.f32 1.0614054, %v926_v16 }
 0x71e   :  { %v928_v19 = vpop.eup %927 }
 0x71f   :  { %v588_v20 = vadd.f32 -1.4531521, %v586_v18  ;;  %v587_v23 = vmul.f32 1.0614054, %v928_v19  ;;  %v930_v38 = vpop.eup %929 }
 0x720   :  { %v932_v40 = vpop.eup %931 }
 0x721   :  { %v590_v24 = vmul.f32 %v926_v16, %v588_v20  ;;  %v589_v25 = vadd.f32 -1.4531521, %v587_v23 }
 0x723   :  { %v592_v26 = vadd.f32 1.4214138, %v590_v24  ;;  %v591_v28 = vmul.f32 %v928_v19, %v589_v25  ;;  %v783_v25 = vld [vmem:[#allocation7 + $0x7] ss:$0 sm:$0xff] }
 0x725   :  { %v594_v29 = vmul.f32 %v926_v16, %v592_v26  ;;  %v593_v30 = vadd.f32 1.4214138, %v591_v28 }
 0x727   :  { %v596_v31 = vadd.f32 -0.28449672, %v594_v29  ;;  %v595_v32 = vmul.f32 %v928_v19, %v593_v30 }
 0x729   :  { %v598_v33 = vmul.f32 %v926_v16, %v596_v31  ;;  %v597_v34 = vadd.f32 -0.28449672, %v595_v32 }
 0x72b   :  { %v600_v35 = vadd.f32 0.2548296, %v598_v33  ;;  %v599_v36 = vmul.f32 %v928_v19, %v597_v34 }
 0x72d   :  { %v602_v37 = vmul.f32 %v926_v16, %v600_v35  ;;  %v601_v3 = vadd.f32 0.2548296, %v599_v36 }
 0x72f   :  { %v612_v39 = vmul.f32 %v930_v38, %v602_v37  ;;  %v603_v4 = vmul.f32 %v928_v19, %v601_v3 }
 0x731   :  { %v614_v41 = vsub.f32 1.0, %v612_v39  ;;  %v613_v44 = vmul.f32 %v932_v40, %v603_v4 }
 0x733   :  { %v616_v45 = vmul.f32 %v614_v41, %v574_v43  ;;  %v615_v46 = vsub.f32 1.0, %v613_v44 }
 0x735   :  { %v618_v48 = vadd.f32 1.0, %v616_v45  ;;  %v617_v49 = vmul.f32 %v615_v46, %v575_v47 }
 0x737   :  { %v619_v52 = vadd.f32 1.0, %v617_v49  ;;  %v620_v53 = vmul.f32 %v618_v48, %v568_v50 }
 0x739   :  { %v621_v56 = vmul.f32 %v619_v52, %v569_v51 }
 0x73b   :  { %v622_v57 = vpack.c.bf16 %v621_v56, %v620_v53 }
 0x73d   :  { %882 = vmatmul.mubr.msk.bf16.vlgmr.msra.gmra.mrb[8].mxu1 %vm280_vm2, %v622_v57 }
 0x810   :  { %v688_v59 = vpop.f32.mrb[8].mxu1 }
 0x811   :  { %v689_v60 = vadd.f32 %v776_v58, %v688_v59  ;;  %v883_v61 = vpop.f32.mrb[9].mxu1 }
 0x812   :  { %v691_v62 = vpop.f32.mrb[10].mxu1 }
 0x813   :  { %v692_v1 = vadd.f32 %v776_v58, %v691_v62  ;;  %v884_v2 = vpop.f32.mrb[11].mxu1  ;;  %v695_v6 = vadd.f32 %v689_v60, %v1191_v54 }
 0x815   :  { %v697_v7 = vsel %vm114_vm1, %v695_v6, 0.0  ;;  %v696_v63 = vadd.f32 %v692_v1, %v1193_v55 }
 0x816   :  { %698 = vadd.xlane.f32.xlu1 %v697_v7 }
 0x817   :  { %v700_v5 = vsel %vm114_vm1, %v696_v63, 0.0 }
 0x818   :  { %701 = vadd.xlane.f32.xlu0 %v700_v5 }
 0x8a3   :  { %v699_v9 = vpop.xlane.xlu1 %698 }
 0x8a4   :  { %v703_v10 = vmul.f32 0.03125, %v699_v9 }
 0x8a5   :  { %v702_v8 = vpop.xlane.xlu0 %701 }
 0x8a6   :  { %v705_v11 = vsub.f32 %v695_v6, %v703_v10  ;;  %v704_v12 = vmul.f32 0.03125, %v702_v8 }
 0x8a8   :  { %v706_v13 = vsub.f32 %v696_v63, %v704_v12  ;;  %v707_v14 = vmul.f32 %v705_v11, %v705_v11 }
 0x8aa   :  { %v709_v0 = vsel %vm114_vm1, %v707_v14, 0.0  ;;  %v708_v15 = vmul.f32 %v706_v13, %v706_v13 }
 0x8ab   :  { %710 = vadd.xlane.f32.xlu1 %v709_v0 }
 0x8ac   :  { %v712_v54 = vsel %vm114_vm1, %v708_v15, 0.0 }
 0x8ad   :  { %713 = vadd.xlane.f32.xlu0 %v712_v54 }
 0x938   :  { %v711_v16 = vpop.xlane.xlu1 %710 }
 0x939   :  { %v715_v55 = vmul.f32 0.03125, %v711_v16 }
 0x93a   :  { %v714_v17 = vpop.xlane.xlu0 %713 }
 0x93b   :  { %v717_v18 = vadd.f32 1e-05, %v715_v55  ;;  %v716_v19 = vmul.f32 0.03125, %v714_v17 }
 0x93d   :  { %933 = vrsqrt.f32 %v717_v18  ;;  %v718_v20 = vadd.f32 1e-05, %v716_v19 }
 0x93f   :  { %935 = vrsqrt.f32 %v718_v20 }
 0x947   :  { %v934_v21 = vpop.eup %933 }
 0x948   :  { %v721_v23 = vmul.f32 %v934_v21, %v705_v11 }
 0x949   :  { %v936_v24 = vpop.eup %935 }
 0x94a   :  { %v722_v26 = vmul.f32 %v936_v24, %v706_v13  ;;  %v727_v27 = vmul.f32 %v782_v22, %v721_v23 }
 0x94c   :  { %v728_v28 = vmul.f32 %v782_v22, %v722_v26  ;;  %v733_v29 = vadd.f32 %v783_v25, %v727_v27 }
 0x94e   :  { %v734_v30 = vadd.f32 %v783_v25, %v728_v28  ;;  %735 = vst.msk [vmem:[#allocation8] sm:$0xff] %vm114_vm1, %v733_v29 }
 0x950   :  { %736 = vst.msk [vmem:[#allocation8 + $0x8] sm:$0xff] %vm114_vm1, %v734_v30 }
 0x951   :  { %1014 = shalt.err (!%p1011_p0)
}
 0x952   :  { %s1015_s30 = scalar_lea.hbm %s1228_s3, 256 }
 0x953   :  { %p1016_p1 = scmp.ne.s32.totalorder %s1228_s3, %s1015_s30  ;;  %p1019_p2 = scmp.lt.u32.totalorder %s1015_s30, %s1228_s3 }
 0x955   :  { %p1021_p3 = pnand %p1019_p2, %p1016_p1 }
 0x957   :  { %1024 = shalt.err (!%p1021_p3)
}
 0x958   :  { %748 = dma.vmem_to_hbm [thread:$0]  %s743_s26, 256, %s1228_s3, [#allocation4], %s1035_s1, %s1035_s1, %s1036_s9  }
 0x959   :  { %1029 = dma.done.wait [#allocation4], 256  }
 0x95a   :  { %1030 = vsyncadd [#allocation4], 4294967040 }
 0x95b   :  { %752 = vsyncpa [#allocation3], 1 }
 0x95c   :  { %753 = vsyncpa [#allocation6], 1 }
 0x95d   :  { %754 = vsyncpa [#allocation4], 1 }

</bundles_post_ra>
